<compile_context>
chip_gen: v5e
topology: v5e:2x2
jax: 0.10.0
libtpu: 0.0.40
codegen_flags: <defaults>
</compile_context>

<pallas_src>
import numpy as np
import jax
import jax.numpy as jnp
from jax.experimental import pallas as pl
from jax.experimental.pallas import tpu as pltpu


_TARGET_BLOCK_BYTES = 4 * 1024 * 1024    # ~4 MiB blocks (per review: v6e/v7x sweet spot)
_VMEM_LIMIT_BYTES = 48 * 1024 * 1024     # explicit; < v7x 64 MiB physical VMEM


def get_sinusoid_encoding_table(n_position: int, d_word_vec: int,
                                dtype=jnp.float32) -> jnp.ndarray:
    """Fixed sinusoid table, shape (1, n_position, d_word_vec).

    Build once per dtype and reuse (it is a registered buffer in the PyTorch module);
    a bf16 copy for bf16 activations halves the table's HBM reads."""
    pos = np.arange(n_position, dtype=np.float64)[:, None]             # (P, 1)
    hid = np.arange(d_word_vec, dtype=np.int64)[None, :]               # (1, D)
    angle_rates = 1.0 / np.power(10000.0, (2 * (hid // 2)) / np.float64(d_word_vec))
    table = pos * angle_rates                                           # (P, D)
    table[:, 0::2] = np.sin(table[:, 0::2])
    table[:, 1::2] = np.cos(table[:, 1::2])
    return jnp.asarray(table[None, :, :], dtype=dtype)                  # (1, P, D)


def _add_pos_kernel(x_ref, pos_ref, o_ref):
    # Elementwise broadcast add over the leading (batch) dim; cast handles the
    # mixed-dtype case (bf16 activations with an f32 table).
    o_ref[...] = (x_ref[...] + pos_ref[...]).astype(o_ref.dtype)


def _largest_multiple_divisor(n: int, unit: int, limit: int) -> int:
    """Largest multiple of `unit` that divides `n` and is <= limit (0 if none)."""
    best = 0
    t = unit
    hi = min(n, limit)
    while t <= hi:
        if n % t == 0:
            best = t
        t += unit
    return best


def _largest_divisor(n: int, limit: int) -> int:
    """Largest divisor of `n` that is <= limit (>= 1)."""
    best = 1
    for d in range(1, min(n, limit) + 1):
        if n % d == 0:
            best = d
    return best


def _forward_2d(x, pos_table, target_bytes):
    """Lane-dense (B, S*D) path: full-width vst stores, minimal pos re-fetch."""
    B, S, D = x.shape
    _, P, _ = pos_table.shape
    N = S * D
    itemsize = x.dtype.itemsize

    x2 = x.reshape(B, N)                  # free reshape (contiguous)
    pos2 = pos_table.reshape(1, P * D)    # free reshape; kernel only DMAs the first N cols

    # Row (sublane) tile: 16 for bf16 packing when possible, else 8; full B if ragged.
    row_unit = 16 if (itemsize == 2 and B % 16 == 0) else 8
    Bt = row_unit if (B % row_unit == 0 and B >= row_unit) else B

    # Column (lane) tile: biggest multiple-of-128 divisor of N within the budget.
    col_limit = max(128, target_bytes // max(1, Bt * itemsize))
    Tn = _largest_multiple_divisor(N, 128, col_limit)       # >= 128 since N % 128 == 0

    # Adaptive row tile: if the whole column extent fits in one tile and there is
    # budget left, grow Bt so tiny per-step blocks don't dominate with fixed overhead.
    if Tn == N and B % row_unit == 0 and Bt < B:
        row_limit = max(Bt, target_bytes // max(1, Tn * itemsize))
        Bt = max(Bt, _largest_multiple_divisor(B, row_unit, row_limit))

    # Guarantee >= 2 grid blocks so both v7x TensorCores / DMA queues participate.
    if (B // Bt) * (N // Tn) == 1 and N % 256 == 0:
        Tn = N // 2

    # Columns OUTER, rows INNER: the pos block index (0, j) is constant across the
    # inner loop, so Pallas skips the redundant pos-tile DMA between row blocks.
    grid = (N // Tn, B // Bt)

    cost = pl.CostEstimate(
        flops=B * N,
        transcendentals=0,
        bytes_accessed=2 * B * N * itemsize + N * pos_table.dtype.itemsize,
    )

    out2 = pl.pallas_call(
        _add_pos_kernel,
        out_shape=jax.ShapeDtypeStruct((B, N), x.dtype),
        grid=grid,
        in_specs=[
            pl.BlockSpec((Bt, Tn), lambda j, i: (i, j)),   # x: (row-tile, col-tile)
            pl.BlockSpec((1, Tn), lambda j, i: (0, j)),    # pos: constant across inner loop
        ],
        out_specs=pl.BlockSpec((Bt, Tn), lambda j, i: (i, j)),
        compiler_params=pltpu.CompilerParams(
            dimension_semantics=("parallel", "parallel"),   # pure elementwise map
            vmem_limit_bytes=_VMEM_LIMIT_BYTES,
        ),
        cost_estimate=cost,
    )(x2, pos2)

    return out2.reshape(B, S, D)


def _forward_3d_fallback(x, pos_table, target_bytes):
    """Bounded (Bt, St, D) tiling for ragged S*D (or huge non-multiple-of-8 B)."""
    B, S, D = x.shape
    itemsize = x.dtype.itemsize

    if S % 8 == 0:
        # No pos slice copy needed: blocks stay within the first S rows of the table.
        seq_limit = max(8, target_bytes // max(1, D * itemsize))
        St = _largest_multiple_divisor(S, 8, seq_limit)
        pos_used = pos_table
    else:
        # Full-extent sublane block requires the pos array's extent to equal St.
        St = S
        pos_used = pos_table[:, :S, :]

    # Leading batch dim has no (8,128) constraint: grow it to fill the block budget.
    batch_limit = max(1, target_bytes // max(1, St * D * itemsize))
    Bt = _largest_divisor(B, batch_limit)

    # Seq OUTER, batch INNER: pos block index constant across the inner (batch) loop.
    grid = (S // St, B // Bt)

    cost = pl.CostEstimate(
        flops=B * S * D,
        transcendentals=0,
        bytes_accessed=2 * B * S * D * itemsize + S * D * pos_table.dtype.itemsize,
    )

    return pl.pallas_call(
        _add_pos_kernel,
        out_shape=jax.ShapeDtypeStruct((B, S, D), x.dtype),
        grid=grid,
        in_specs=[
            pl.BlockSpec((Bt, St, D), lambda s, b: (b, s, 0)),
            pl.BlockSpec((1, St, D), lambda s, b: (0, s, 0)),
        ],
        out_specs=pl.BlockSpec((Bt, St, D), lambda s, b: (b, s, 0)),
        compiler_params=pltpu.CompilerParams(
            dimension_semantics=("parallel", "parallel"),
            vmem_limit_bytes=_VMEM_LIMIT_BYTES,
        ),
        cost_estimate=cost,
    )(x, pos_used)


def positional_encoding_forward(x: jnp.ndarray, pos_table: jnp.ndarray,
                                target_block_bytes: int = _TARGET_BLOCK_BYTES) -> jnp.ndarray:
    """x: (B, S, D); pos_table: (1, n_position, D). Returns x + pos_table[:, :S]."""
    B, S, D = x.shape
    _, P, Dp = pos_table.shape
    assert Dp == D, "pos_table feature dim must match x"
    assert S <= P, "sequence length exceeds n_position"

    N = S * D
    itemsize = x.dtype.itemsize

    # Lane-dense 2-D path when the flattened columns tile cleanly; otherwise the
    # bounded 3-D fallback (also used if a ragged-B full-extent row block would
    # overrun the VMEM budget).
    if N % 128 == 0 and (B % 8 == 0 or B * 128 * itemsize <= 2 * target_block_bytes):
        return _forward_2d(x, pos_table, target_block_bytes)
    return _forward_3d_fallback(x, pos_table, target_block_bytes)


if __name__ == "__main__":
    d_word_vec = 32
    n_position = 200
    B, S = 2, 8

    key = jax.random.PRNGKey(0)

    # --- f32 path (main, lane-dense) ---
    pos_table_f32 = get_sinusoid_encoding_table(n_position, d_word_vec, jnp.float32)
    x = jax.random.normal(key, (B, S, d_word_vec), dtype=jnp.float32)
    out = jax.block_until_ready(positional_encoding_forward(x, pos_table_f32))
    ref = x + pos_table_f32[:, :S, :]
    assert out.shape == (B, S, d_word_vec)
    assert jnp.allclose(out, ref, atol=1e-6), "f32 mismatch vs reference"

    # --- bf16 path with a matched-dtype (bf16) table: halves table HBM reads ---
    pos_table_bf16 = get_sinusoid_encoding_table(n_position, d_word_vec, jnp.bfloat16)
    x_bf16 = x.astype(jnp.bfloat16)
    out_bf16 = jax.block_until_ready(positional_encoding_forward(x_bf16, pos_table_bf16))
    ref_bf16 = (x_bf16.astype(jnp.float32) + pos_table_f32[:, :S, :]).astype(jnp.bfloat16)
    assert jnp.allclose(out_bf16.astype(jnp.float32),
                        ref_bf16.astype(jnp.float32), atol=5e-2, rtol=5e-2), \
        "bf16 mismatch vs reference"

    # --- larger batch exercises the adaptive row tile (Bt grows to fill the block) ---
    x_big = jax.random.normal(jax.random.PRNGKey(1), (32, S, d_word_vec), dtype=jnp.float32)
    out_big = jax.block_until_ready(positional_encoding_forward(x_big, pos_table_f32))
    ref_big = x_big + pos_table_f32[:, :S, :]
    assert jnp.allclose(out_big, ref_big, atol=1e-6), "adaptive-Bt mismatch vs reference"

    # --- ragged S*D (not a multiple of 128) exercises the bounded 3-D fallback ---
    d_ragged = 24
    pos_table_r = get_sinusoid_encoding_table(n_position, d_ragged, jnp.float32)
    x_r = jax.random.normal(jax.random.PRNGKey(2), (B, S, d_ragged), dtype=jnp.float32)
    out_r = jax.block_until_ready(positional_encoding_forward(x_r, pos_table_r))
    ref_r = x_r + pos_table_r[:, :S, :]
    assert jnp.allclose(out_r, ref_r, atol=1e-6), "ragged fallback mismatch vs reference"

    print("KERNEL_OK")
</pallas_src>

<mosaic_0001>
module attributes {stable_mosaic.version = 11 : i64} {
  func.func @_add_pos_kernel(%arg0: i32, %arg1: i32, %arg2: memref<2x128xf32, #tpu.memory_space<vmem>>, %arg3: memref<1x128xf32, #tpu.memory_space<vmem>>, %arg4: memref<2x128xf32, #tpu.memory_space<vmem>>) attributes {dimension_semantics = [#tpu.dimension_semantics<parallel>, #tpu.dimension_semantics<parallel>], iteration_bounds = array<i64: 2, 1>, scalar_prefetch = 0 : i64, scratch_operands = 0 : i64, tpu.core_type = #tpu.core_type<tc>, window_params = [{transform_indices = @transform_0, window_bounds = array<i64: 2, 128>}, {transform_indices = @transform_1, window_bounds = array<i64: 1, 128>}, {transform_indices = @transform_2, window_bounds = array<i64: 2, 128>}]} {
    %c0 = arith.constant 0 : index
    %c0_0 = arith.constant 0 : index
    %0 = vector.load %arg2[%c0, %c0_0] : memref<2x128xf32, #tpu.memory_space<vmem>>, vector<2x128xf32>
    %c0_1 = arith.constant 0 : index
    %c0_2 = arith.constant 0 : index
    %1 = vector.load %arg3[%c0_1, %c0_2] : memref<1x128xf32, #tpu.memory_space<vmem>>, vector<1x128xf32>
    %2 = vector.broadcast %1 : vector<1x128xf32> to vector<2x128xf32>
    %3 = arith.addf %0, %2 : vector<2x128xf32>
    %c0_3 = arith.constant 0 : index
    %c0_4 = arith.constant 0 : index
    %4 = vector.load %arg4[%c0_3, %c0_4] : memref<2x128xf32, #tpu.memory_space<vmem>>, vector<2x128xf32>
    tpu.vector_store %arg4[%c0_3, %c0_4], %3 {strides = array<i32>} : memref<2x128xf32, #tpu.memory_space<vmem>>, vector<2x128xf32>,
    return
  }
  func.func @transform_0(%arg0: i32, %arg1: i32) -> (i32, i32) {
    %c0_i32 = arith.constant 0 : i32
    return %arg1, %arg0 : i32, i32
  }
  func.func @transform_1(%arg0: i32, %arg1: i32) -> (i32, i32) {
    %c0_i32 = arith.constant 0 : i32
    %c0_i32_0 = arith.constant 0 : i32
    return %c0_i32, %arg0 : i32, i32
  }
  func.func @transform_2(%arg0: i32, %arg1: i32) -> (i32, i32) {
    %c0_i32 = arith.constant 0 : i32
    return %arg1, %arg0 : i32, i32
  }
}

</mosaic_0001>

<bundles_post_ra>
// kernel: tpu_custom_call.1
= control target key start
LH: loop header
LB: loop body
LE: loop exit
PB: predicated region body
PF: predicated region fallthrough
CT: control target
= control target key end

     0   :  { %7 = vsyncpa [#allocation3], 0  ;;  %s714_s0 = inlined_call_operand.hbm [shape: f32[2,256], index: 0, kind: input, shape index: {}]   ;;  %s715_s1 = inlined_call_operand.hbm [shape: f32[1,6400], index: 1, kind: input, shape index: {}]   ;;  %s716_s2 = inlined_call_operand.hbm [shape: f32[2,256], index: 2, kind: output, shape index: {}]  }
   0x1   :  { %9 = vsyncpa [#allocation3 + $0x1], 0 }
   0x2   :  { %10 = vsyncpa [#allocation6], 0 }
   0x3   :  { %12 = vsyncpa [#allocation6 + $0x1], 0 }
   0x4   :  { %13 = vsyncpa [#allocation4], 0 }
   0x5   :  { %15 = vsyncpa [#allocation4 + $0x1], 0  ;;  %s584_s9 = smov 0   ;;  %s586_s10 = smov 0  }
   0x6   :  { %s588_s11 = smov 0   ;;  %s590_s12 = smov 0  }
   0x7   :  { %s592_s13 = smov 0   ;;  %s594_s14 = smov 0  }
   0x8 LB: > { %s340_s15 = sadd.s32 4294967295, %s567_s14   ;;  %s341_s16 = sadd.s32 4294967294, %s567_s14   ;;  %s567_s14 = sphi %s594_s14, %s21_s14   ;;  %s563_s13 = sphi %s592_s13, %s725_s13   ;;  %s559_s12 = sphi %s590_s12, %s724_s12   ;;  %s555_s11 = sphi %s588_s11, %s723_s11   ;;  %s551_s10 = sphi %s586_s10, %s722_s10   ;;  %s547_s9 = sphi %s584_s9, %s721_s9  }
   0x9   : > { %s33_s17 = sadd.s32 1, %s563_s13  ;;  %s42_s18 = sadd.s32 1, %s555_s11 }
   0xa   : > { %p35_p0 = scmp.ge.s32.totalorder %s33_s17, 2  ;;  %p49_p1 = scmp.ne.s32.totalorder %s555_s11, %s551_s10 }
   0xb   : > { %p50_p2 = scmp.eq.s32.totalorder %s567_s14, 0  ;;  %p55_p3 = scmp.ne.s32.totalorder %s551_s10, %s547_s9 }
   0xc   : > { %s727_s17 = smov (%p35_p0, %s33_s17), 0  ;;  %p56_p5 = scmp.eq.s32.totalorder %s340_s15, 0 }
   0xd   : > { %p625_p4 = por %p50_p2, %p49_p1  ;;  %s38_s20 = ssub.s32 %s563_s13, %s727_s17 }
   0xe   : > { %p107_p6 = scmp.eq.s32.totalorder %s340_s15, 1  ;;  %p40_p7 = scmp.eq.s32.totalorder %s38_s20, 0 }
   0xf   : > { %p631_p8 = por %p56_p5, %p55_p3  ;;  %p113_p10 = scmp.eq.s32.totalorder %s341_s16, 1 }
  0x10   : > { %p635_p9 = por %p107_p6, %p49_p1  ;;  %p343_p12 = scmp.ge.s32.totalorder %s567_s14, 2 }
  0x11   : > { %s640_s23 = scalar_select %p40_p7, %s555_s11, %s42_s18  }
  0x12   : > { %p642_p11 = por %p113_p10, %p55_p3  ;;  %p370_p13 = scmp.lt.s32.totalorder %s567_s14, 2 }
  0x13   : > { %s133_s25 = sand.u32 1, %s555_s11   ;;  %s345_s27 = sshll.u32 %s563_s13, 1 }
  0x14   : > { %s344_s26 = sshll.u32 %s133_s25, 1  ;;  %s143_s30 = scalar_lea.hbm %s714_s0, %s345_s27 }
  0x15   : > { %s137_s3 = scalar_lea.vmem [#allocation2], %s344_s26  ;;  %s145_s5 = sshll.u32 %s143_s30, 4  ;;  %s146_s5 = int_to_ptr.hbm [resolvable:$true] %s145_s5 }
  0x16   : > { %s147_s4 = sshll.u32 %s137_s3, 4  ;;  %p360_p0 = pnand %p370_p13, %p625_p4  ;;  %s148_s4 = int_to_ptr.vmem [resolvable:$true] %s147_s4 }
  0x17   : > { %p346_p1 = scmp.ge.s32.totalorder %s567_s14, 1  ;;  %p169_p2 = scmp.lt.s32.totalorder %s567_s14, 3 }
  0x18   : > { %s134_s6 = scalar_lea.sflag [#allocation3], %s133_s25  ;;  %s160_s15 = scalar_lea.hbm %s715_s1, %s563_s13 }
  0x19   : > { %362 = dma.hbm_to_vmem [thread:$0]  (!%p360_p0), %s146_s5, 32, %s148_s4, %s134_s6  }
  0x1a   : > { %p170_p3 = pnand %p346_p1, %p169_p2  ;;  %s157_s16 = scalar_lea.vmem [#allocation5], %s133_s25 }
  0x1b   : > { %s164_s18 = sshll.u32 %s157_s16, 4  ;;  %s162_s20 = sshll.u32 %s160_s15, 4  ;;  %s165_s18 = int_to_ptr.vmem [resolvable:$true] %s164_s18  ;;  %s163_s20 = int_to_ptr.hbm [resolvable:$true] %s162_s20 }
  0x1c   : > { %s155_s26 = scalar_lea.sflag [#allocation6], %s133_s25  ;;  %173 = sbr.rel (%p170_p3) target bundleno = 51 (0x33), region = 28 }
  0x1d   : > { %365 = dma.hbm_to_vmem [thread:$0]  (!%p360_p0), %s163_s20, 16, %s165_s18, %s155_s26  }
  0x1e   : > { %s662_s19 = sand.u32 (!%p170_p3), 1, %s551_s10  }
  0x1f   : > { %s347_s27 = sshll.u32 (!%p170_p3), %s662_s19, 1  ;;  %s176_s28 = scalar_lea.sflag (!%p170_p3), [#allocation3], %s662_s19 }
  0x20   : > { %s179_s29 = scalar_lea.vmem (!%p170_p3), [#allocation2], %s347_s27 }
  0x21   : > { %534 = dma.done.wait (%p631_p8), %s176_s28, 32  }
  0x22   : > { %536 = vsyncadd (%p631_p8), %s176_s28, 4294967264  ;;  %s186_s25 = scalar_lea.sflag [#allocation6], %s662_s19  ;;  %s188_s30 = scalar_lea.vmem [#allocation5], %s662_s19 }
  0x23   : > { %538 = dma.done.wait (%p631_p8), %s186_s25, 16  }
  0x24   : > { %540 = vsyncadd (%p631_p8), %s186_s25, 4294967280  ;;  %s350_s3 = sshll.u32 %s559_s12, 1  ;;  %s213_s7 = scalar_lea.vmem [#allocation7], %s347_s27  ;;  %v214_v0 = vld [vmem:[%s179_s29] sm:$0x3] }
  0x25   : > { %s234_s6 = scalar_lea.hbm %s716_s2, %s350_s3  ;;  %s236_s8 = sshll.u32 %s213_s7, 4  ;;  %v420_v1 = vld [vmem:[%s188_s30] ss:$0 sm:$0xff]  ;;  %s237_s8 = int_to_ptr.vmem [resolvable:$true] %s236_s8 }
  0x26   : > { %s238_s15 = sshll.u32 %s234_s6, 4  ;;  %v219_v2 = vadd.f32 %v420_v1, %v214_v0  ;;  %s222_s16 = scalar_lea.sflag [#allocation4], %s662_s19  ;;  %s239_s15 = int_to_ptr.hbm [resolvable:$true] %s238_s15 }
  0x27   : > { %s495_s21 = sshra.s32 %s239_s15, 4  ;;  %s501_s26 = scalar_lea.hbm %s716_s2, 4  ;;  %s496_s21 = int_to_ptr.hbm [resolvable:$true] %s495_s21 }
  0x28   : > { %220 = vst [vmem:[%s213_s7] sm:$0x3] %v219_v2  ;;  %s497_s18 = scalar_lea.hbm %s496_s21, 2  ;;  %p502_p7 = scmp.lt.s32.totalorder %s496_s21, %s716_s2 }
  0x29   : > { %p498_p4 = scmp.ne.s32.totalorder %s496_s21, %s497_s18  ;;  %p503_p8 = scmp.lt.s32.totalorder %s501_s26, %s497_s18 }
  0x2b   : > { %p499_p5 = pnand %p498_p4, %p635_p9  ;;  %p504_p10 = por %p503_p8, %p502_p7 }
  0x2d   : > { %p500_p6 = pneg %p499_p5 }
  0x2f   : > { %p505_p13 = pnand %p504_p10, %p500_p6 }
  0x31   : > { %508 = shalt.err (!%p505_p13)
}
  0x32   : > { %357 = dma.vmem_to_hbm [thread:$0]  (%p635_p9), %s237_s8, 32, %s239_s15, %s222_s16  }
  0x33 PF: > { %s250_s19 = sand.u32 1, %s547_s9   ;;  %p367_p0 = pnand %p343_p12, %p642_p11 }
  0x34   : > { %s251_s29 = scalar_lea.sflag [#allocation4], %s250_s19 }
  0x35   : > { %p368_p1 = pneg %p367_p0 }
  0x37   : > { %542 = dma.done.wait (%p368_p1), %s251_s29, 32  }
  0x38   : > { %544 = vsyncadd (%p368_p1), %s251_s29, 4294967264  ;;  %s21_s14 = sadd.s32 1, %s567_s14   ;;  %s721_s9 = smov %s551_s10 }
  0x39   : > { %p18_p2 = scmp.ge.s32.totalorder %s21_s14, 4   ;;  %s722_s10 = smov %s555_s11 }
  0x3a   : > { %s723_s11 = smov %s640_s23  ;;  %s724_s12 = smov %s563_s13 }
  0x3b   : > { %s725_s13 = smov %s727_s17  ;;  %20 = sbr.rel (!%p18_p2) target bundleno = 8 (0x8), region = 86 }
  0x40   :  { %257 = vsyncpa [#allocation3], 1 }
  0x41   :  { %259 = vsyncpa [#allocation3 + $0x1], 1 }
  0x42   :  { %260 = vsyncpa [#allocation6], 1 }
  0x43   :  { %262 = vsyncpa [#allocation6 + $0x1], 1 }
  0x44   :  { %263 = vsyncpa [#allocation4], 1 }
  0x45   :  { %265 = vsyncpa [#allocation4 + $0x1], 1 }

</bundles_post_ra>
